<compile_context>
chip_gen: v7x
topology: tpu7x:2x2x1
jax: 0.10.0
libtpu: 0.0.40
codegen_flags: <defaults>
</compile_context>

<pallas_src>
import functools

import jax
import jax.numpy as jnp
import numpy as np
from jax.experimental import pallas as pl
from jax.experimental.pallas import tpu as pltpu


def make_gating_kernel(k: int, tile_rows: int, total_rows: int):
    """Kernel body with top-k `k`, tile size, and the true batch size baked in."""

    def gating_kernel(x_ref, wt_ref, b_ref, gates_ref, load_ref):
        x = x_ref[...]                      # (TB, D) f32, streamed per grid step
        wt = wt_ref[...]                    # (D, E)  f32, resident across the grid
        b = b_ref[...]                      # (1, E)  f32, resident

        # clean_logits = w_gate(x) on the MXU.
        logits = jnp.dot(x, wt, preferred_element_type=jnp.float32) + b   # (TB, E)

        # k-th largest per row via iterative max-masking; the first max doubles as
        # the softmax shift. (Exact ties could select >k entries; measure-zero with
        # float logits vs. torch.topk's deterministic k-element pick.)
        neg_inf = jnp.float32(-jnp.inf)
        row_max = jnp.max(logits, axis=1, keepdims=True)     # 1st largest
        kth = row_max
        work = jnp.where(logits >= kth, neg_inf, logits)
        for _ in range(k - 1):                               # static unroll, k is tiny
            kth = jnp.max(work, axis=1, keepdims=True)
            work = jnp.where(work >= kth, neg_inf, work)
        topk_mask = logits >= kth                            # exactly the top-k per row

        # softmax over the top-k logits, scattered back to expert positions.
        e = jnp.where(topk_mask, jnp.exp(logits - row_max), jnp.float32(0.0))
        denom = jnp.sum(e, axis=1, keepdims=True)
        # approx=False keeps exact 1e-5 parity with the f32 reference; approx=True
        # would move the divide to the otherwise-idle EUP slot at ~1e-3 relative cost.
        gates = e * pl.reciprocal(denom, approx=False)       # (TB, E)
        gates_ref[...] = gates

        # load = (gates > 0).sum(0): per-block partial counts; padded rows masked out
        # so the batch axis can stay "parallel" (no in-kernel accumulator).
        row = (pl.program_id(0) * tile_rows
               + jax.lax.broadcasted_iota(jnp.int32, (tile_rows, 1), 0))
        valid = row < total_rows
        counts = jnp.sum(jnp.where(valid & (gates > 0), 1, 0),
                         axis=0, keepdims=True).astype(jnp.int32)        # (1, E)
        load_ref[...] = counts.reshape(1, 1, -1)

    return gating_kernel


def _choose_tile_rows(batch: int, input_dim: int, max_tile_rows: int) -> int:
    """Target >=512-row tiles for pipelining, capped so double-buffered x tiles stay
    ~<=16 MiB (safe inside v7x's 64 MiB VMEM); always a multiple of 8 sublanes."""
    vmem_rows = max(8, ((16 << 20) // (2 * input_dim * 4)) // 8 * 8)
    tb = min(max_tile_rows, vmem_rows)
    if batch <= tb:
        return max(8, -(-batch // 8) * 8)   # single block, rounded up to sublanes
    return tb


def gating_forward(x, wt, b_gate, k, *, max_tile_rows=512):
    """x: (B, D) f32; wt: (D, E) f32 (gate weight, pre-transposed once at init);
    b_gate: (E,) f32. Returns (gates (B, E) f32, load (E,) int32)."""
    B, D = x.shape
    E = wt.shape[1]
    tb = _choose_tile_rows(B, D, max_tile_rows)
    num_blocks = -(-B // tb)
    b_pad = num_blocks * tb
    if b_pad != B:
        x = jnp.pad(x, ((0, b_pad - B), (0, 0)))
    b2 = b_gate.reshape(1, E)

    # VMEM budget: double-buffered x/gates tiles + resident weight/bias, with 2x
    # headroom, clamped well under the smallest (v7x, 64 MiB) physical VMEM.
    tile_bytes = (2 * tb * D + D * E + 2 * tb * E + 2 * E) * 4
    vmem_limit = int(min(max(32 << 20, 2 * tile_bytes), 48 << 20))

    gates_full, load_partials = pl.pallas_call(
        make_gating_kernel(k, tb, B),
        grid=(num_blocks,),
        out_shape=(
            jax.ShapeDtypeStruct((b_pad, E), jnp.float32),
            jax.ShapeDtypeStruct((num_blocks, 1, E), jnp.int32),
        ),
        in_specs=[
            pl.BlockSpec((tb, D), lambda i: (i, 0)),        # x: streamed per block
            pl.BlockSpec((D, E), lambda i: (0, 0)),         # weight: resident
            pl.BlockSpec((1, E), lambda i: (0, 0)),         # bias: resident
        ],
        out_specs=(
            pl.BlockSpec((tb, E), lambda i: (i, 0)),        # gates per block
            pl.BlockSpec((1, 1, E), lambda i: (i, 0, 0)),   # per-block load partials
        ),
        compiler_params=pltpu.CompilerParams(
            dimension_semantics=("parallel",),              # megacore sharding
            vmem_limit_bytes=vmem_limit,
        ),
    )(x, wt, b2)

    gates = gates_full[:B] if b_pad != B else gates_full
    load = load_partials.reshape(num_blocks, E).sum(axis=0).astype(jnp.int32)
    return gates, load


def ref_forward(x, w_gate, b_gate, k):
    """Pure-JAX reference mirroring the torch module with train=False."""
    logits = x @ w_gate.T + b_gate[None, :]
    top_vals, top_idx = jax.lax.top_k(logits, k)             # top_k_logits / indices
    top_gates = jax.nn.softmax(top_vals, axis=1)
    gates = jnp.zeros_like(logits)
    gates = gates.at[jnp.arange(x.shape[0])[:, None], top_idx].set(top_gates)
    load = (gates > 0).sum(0).astype(jnp.int32)
    return gates, load


if __name__ == "__main__":
    # GatingModule(expert_num=8, act_expert_num=2, input_dim=32), batch=8.
    batch, input_dim, expert_num, act_k = 8, 32, 8, 2

    key = jax.random.PRNGKey(0)
    kx, kw, kb = jax.random.split(key, 3)
    x = jax.random.normal(kx, (batch, input_dim), dtype=jnp.float32)
    # nn.Linear(input_dim, expert_num): W (E, D), b (E,). Transpose ONCE at "init".
    w_gate = jax.random.normal(kw, (expert_num, input_dim), dtype=jnp.float32) * 0.1
    b_gate = jax.random.normal(kb, (expert_num,), dtype=jnp.float32) * 0.01
    wt = jnp.transpose(w_gate)              # (D, E), stored pre-transposed at init
    # TODO(synk): train=True branch (softplus noise stddev + randn noise +
    #             prob_in_topk Normal-CDF load) not implemented; this reproduces
    #             the train=False forward.

    fwd = jax.jit(functools.partial(gating_forward, k=act_k))
    gates, load = fwd(x, wt, b_gate)
    jax.block_until_ready(gates)
    jax.block_until_ready(load)

    gates_ref, load_ref = ref_forward(x, w_gate, b_gate, act_k)
    np.testing.assert_allclose(np.asarray(gates), np.asarray(gates_ref),
                               rtol=1e-5, atol=1e-5)
    np.testing.assert_array_equal(np.asarray(load), np.asarray(load_ref))

    print("KERNEL_OK")
</pallas_src>

<mosaic_0001>
module attributes {stable_mosaic.version = 11 : i64} {
  func.func @gating_kernel(%arg0: i32, %arg1: memref<8x32xf32, #tpu.memory_space<vmem>>, %arg2: memref<32x8xf32, #tpu.memory_space<vmem>>, %arg3: memref<1x8xf32, #tpu.memory_space<vmem>>, %arg4: memref<8x8xf32, #tpu.memory_space<vmem>>, %arg5: memref<1x1x8xi32, #tpu.memory_space<vmem>>) attributes {dimension_semantics = [#tpu.dimension_semantics<parallel>], iteration_bounds = array<i64: 1>, scalar_prefetch = 0 : i64, scratch_operands = 0 : i64, tpu.core_type = #tpu.core_type<tc>, window_params = [{transform_indices = @transform_0, window_bounds = array<i64: 8, 32>}, {pipeline_mode = #tpu.pipeline_mode<synchronous>, transform_indices = @transform_1, window_bounds = array<i64: 32, 8>}, {pipeline_mode = #tpu.pipeline_mode<synchronous>, transform_indices = @transform_2, window_bounds = array<i64: 1, 8>}, {transform_indices = @transform_3, window_bounds = array<i64: 8, 8>}, {transform_indices = @transform_4, window_bounds = array<i64: 1, 1, 8>}]} {
    %c0 = arith.constant 0 : index
    %c0_0 = arith.constant 0 : index
    %0 = vector.load %arg1[%c0, %c0_0] : memref<8x32xf32, #tpu.memory_space<vmem>>, vector<8x32xf32>
    %c0_1 = arith.constant 0 : index
    %c0_2 = arith.constant 0 : index
    %1 = vector.load %arg2[%c0_1, %c0_2] : memref<32x8xf32, #tpu.memory_space<vmem>>, vector<32x8xf32>
    %c0_3 = arith.constant 0 : index
    %c0_4 = arith.constant 0 : index
    %2 = vector.load %arg3[%c0_3, %c0_4] : memref<1x8xf32, #tpu.memory_space<vmem>>, vector<1x8xf32>
    %cst = arith.constant dense<0.000000e+00> : vector<8x8xf32>
    %3 = tpu.matmul %0, %1, %cst {dimension_numbers = #tpu.dot_dimension_numbers<[1], [0], [0], [1], [0, 0, 1, 1], [], []>} : vector<8x32xf32>, vector<32x8xf32>, vector<8x8xf32> -> vector<8x8xf32>
    %4 = vector.broadcast %2 : vector<1x8xf32> to vector<8x8xf32>
    %5 = arith.addf %3, %4 : vector<8x8xf32>
    %cst_5 = arith.constant dense<0xFF800000> : vector<8xf32>
    %6 = vector.multi_reduction <maximumf>, %5, %cst_5 [1] : vector<8x8xf32> to vector<8xf32>
    %7 = vector.shape_cast %6 : vector<8xf32> to vector<8x1xf32>
    %8 = vector.broadcast %7 : vector<8x1xf32> to vector<8x8xf32>
    %9 = arith.cmpf oge, %5, %8 : vector<8x8xf32>
    %cst_6 = arith.constant 0xFF800000 : f32
    %10 = vector.broadcast %cst_6 : f32 to vector<8x8xf32>
    %11 = arith.select %9, %10, %5 : vector<8x8xi1>, vector<8x8xf32>
    %cst_7 = arith.constant dense<0xFF800000> : vector<8xf32>
    %12 = vector.multi_reduction <maximumf>, %11, %cst_7 [1] : vector<8x8xf32> to vector<8xf32>
    %13 = vector.shape_cast %12 : vector<8xf32> to vector<8x1xf32>
    %14 = vector.broadcast %13 : vector<8x1xf32> to vector<8x8xf32>
    %15 = arith.cmpf oge, %5, %14 : vector<8x8xf32>
    %16 = vector.broadcast %7 : vector<8x1xf32> to vector<8x8xf32>
    %17 = arith.subf %5, %16 : vector<8x8xf32>
    %18 = math.exp %17 : vector<8x8xf32>
    %cst_8 = arith.constant 0.000000e+00 : f32
    %19 = vector.broadcast %cst_8 : f32 to vector<8x8xf32>
    %20 = arith.select %15, %18, %19 : vector<8x8xi1>, vector<8x8xf32>
    %cst_9 = arith.constant dense<0.000000e+00> : vector<8xf32>
    %21 = vector.multi_reduction <add>, %20, %cst_9 [1] : vector<8x8xf32> to vector<8xf32>
    %22 = vector.shape_cast %21 : vector<8xf32> to vector<8x1xf32>
    %23 = tpu.reciprocal %22 : vector<8x1xf32> -> vector<8x1xf32>
    %24 = vector.broadcast %23 : vector<8x1xf32> to vector<8x8xf32>
    %25 = arith.mulf %20, %24 : vector<8x8xf32>
    %c0_10 = arith.constant 0 : index
    %c0_11 = arith.constant 0 : index
    %26 = vector.load %arg4[%c0_10, %c0_11] : memref<8x8xf32, #tpu.memory_space<vmem>>, vector<8x8xf32>
    tpu.vector_store %arg4[%c0_10, %c0_11], %25 {strides = array<i32>} : memref<8x8xf32, #tpu.memory_space<vmem>>, vector<8x8xf32>,
    %c8_i32 = arith.constant 8 : i32
    %27 = arith.muli %arg0, %c8_i32 : i32
    %28 = tpu.iota {dimensions = array<i32: 0>} : vector<8x1xi32>
    %29 = vector.broadcast %27 : i32 to vector<8x1xi32>
    %30 = arith.addi %29, %28 : vector<8x1xi32>
    %c8_i32_12 = arith.constant 8 : i32
    %31 = vector.broadcast %c8_i32_12 : i32 to vector<8x1xi32>
    %32 = arith.cmpi slt, %30, %31 : vector<8x1xi32>
    %cst_13 = arith.constant 0.000000e+00 : f32
    %33 = vector.broadcast %cst_13 : f32 to vector<8x8xf32>
    %34 = arith.cmpf ogt, %25, %33 : vector<8x8xf32>
    %35 = vector.broadcast %32 : vector<8x1xi1> to vector<8x8xi1>
    %36 = arith.andi %35, %34 : vector<8x8xi1>
    %c1_i32 = arith.constant 1 : i32
    %c0_i32 = arith.constant 0 : i32
    %37 = vector.broadcast %c1_i32 : i32 to vector<8x8xi32>
    %38 = vector.broadcast %c0_i32 : i32 to vector<8x8xi32>
    %39 = arith.select %36, %37, %38 : vector<8x8xi1>, vector<8x8xi32>
    %cst_14 = arith.constant dense<0> : vector<8xi32>
    %40 = vector.multi_reduction <add>, %39, %cst_14 [0] : vector<8x8xi32> to vector<8xi32>
    %41 = vector.shape_cast %40 : vector<8xi32> to vector<1x8xi32>
    %42 = vector.shape_cast %41 : vector<1x8xi32> to vector<1x1x8xi32>
    %c0_15 = arith.constant 0 : index
    %c0_16 = arith.constant 0 : index
    %c0_17 = arith.constant 0 : index
    %43 = vector.load %arg5[%c0_15, %c0_16, %c0_17] : memref<1x1x8xi32, #tpu.memory_space<vmem>>, vector<1x1x8xi32>
    tpu.vector_store %arg5[%c0_15, %c0_16, %c0_17], %42 {strides = array<i32>} : memref<1x1x8xi32, #tpu.memory_space<vmem>>, vector<1x1x8xi32>,
    return
  }
  func.func @transform_0(%arg0: i32) -> (i32, i32) {
    %c0_i32 = arith.constant 0 : i32
    %c0_i32_0 = arith.constant 0 : i32
    return %arg0, %c0_i32 : i32, i32
  }
  func.func @transform_1(%arg0: i32) -> (i32, i32) {
    %c0_i32 = arith.constant 0 : i32
    %c0_i32_0 = arith.constant 0 : i32
    %c0_i32_1 = arith.constant 0 : i32
    return %c0_i32, %c0_i32_0 : i32, i32
  }
  func.func @transform_2(%arg0: i32) -> (i32, i32) {
    %c0_i32 = arith.constant 0 : i32
    %c0_i32_0 = arith.constant 0 : i32
    %c0_i32_1 = arith.constant 0 : i32
    return %c0_i32, %c0_i32_0 : i32, i32
  }
  func.func @transform_3(%arg0: i32) -> (i32, i32) {
    %c0_i32 = arith.constant 0 : i32
    %c0_i32_0 = arith.constant 0 : i32
    return %arg0, %c0_i32 : i32, i32
  }
  func.func @transform_4(%arg0: i32) -> (i32, i32, i32) {
    %c0_i32 = arith.constant 0 : i32
    %c0_i32_0 = arith.constant 0 : i32
    %c0_i32_1 = arith.constant 0 : i32
    return %arg0, %c0_i32, %c0_i32_0 : i32, i32, i32
  }
}

</mosaic_0001>

<bundles_post_ra>
// kernel: gating_forward.1
= control target key start
LH: loop header
LB: loop body
LE: loop exit
PB: predicated region body
PF: predicated region fallthrough
CT: control target
= control target key end

     0   :  { %10 = vsyncpa [#allocation3], 0  ;;  %v254_v3 = vmov 0.0|0.0   ;;  %vm255_vm0 = vmmov 0   ;;  %v256_v6 = vmov 0.0   ;;  %s332_s0 = inlined_call_operand.vmem [shape: f32[8,32], index: 0, kind: input, shape index: {}]   ;;  %s333_s1 = inlined_call_operand.vmem [shape: f32[32,8], index: 1, kind: input, shape index: {}]   ;;  %s334_s2 = inlined_call_operand.vmem [shape: f32[1,8], index: 2, kind: input, shape index: {}]   ;;  %s335_s3 = inlined_call_operand.hbm [shape: f32[8,8], index: 3, kind: output, shape index: {0}]   ;;  %s336_s4 = inlined_call_operand.hbm [shape: s32[1,1,8], index: 4, kind: output, shape index: {1}]  }
   0x1   :  { %v19_v0 = vld [vmem:[%s333_s1] sm:$0xff]  ;;  %v20_v1 = vld [vmem:[%s333_s1 + $0x8] sm:$0xff]  ;;  %v21_v2 = vld [vmem:[%s333_s1 + $0x10] sm:$0xff]  ;;  %190 = vmatprep.subr.bf16.mxu0 %v254_v3  ;;  %187 = vmatprep.mubr.msk.f32.mxu0 %vm255_vm0, %v256_v6 }
   0x2   :  { %v191_v4 = vpack.c.bf16 %v20_v1, %v19_v0  ;;  %v22_v5 = vld [vmem:[%s333_s1 + $0x18] sm:$0xff] }
   0x3   :  { %11 = vsyncpa [#allocation5], 0  ;;  %v194_v7 = vpack.c.bf16 %v22_v5, %v21_v2  ;;  %v18_v8 = vld [vmem:[%s332_s0] sm:$0xff]  ;;  %vm30_vm1 = vcmask 261120   ;;  %vm104_vm2 = vcmask 64512   ;;  %s257_s0 = smov [#allocation2]  }
   0x4   :  { %192 = vmatpush3.bf16.msra.mxu0 %v191_v4  ;;  %v172_v9 = vld [vmem:[%s334_s2] ss:$0 sm:$0xff]  ;;  %s150_s1 = sshll.u32 %s257_s0, 4  ;;  %v258_v26 = vmov 0   ;;  %s151_s1 = int_to_ptr.vmem [resolvable:$true] %s150_s1 }
   0x5   :  { %193 = vmatprep.subr.bf16.mxu0 %v254_v3  ;;  %s206_s2 = scalar_lea.vmem %s151_s1, 128  ;;  %p211_p1 = scmp.lt.s32.totalorder %s151_s1, %s151_s1 }
   0x6   :  { %p207_p0 = scmp.ne.s32.totalorder %s151_s1, %s206_s2  ;;  %p212_p2 = scmp.lt.s32.totalorder %s206_s2, %s206_s2 }
   0x8   :  { %195 = vmatpush3.bf16.msra.mxu0 %v194_v7  ;;  %p213_p3 = por %p212_p2, %p211_p1 }
   0xa   :  { %p214_p4 = pnand %p213_p3, %p207_p0 }
   0xb   :  { %188 = vmatmul.mubr.msk.f32.vlgmr.msra.gmra.mrb[0].mxu0 %vm30_vm1, %v18_v8 }
  0xde   :  { %v100_v10 = vpop.f32.mrb[0].mxu0 }
  0xdf   :  { %v101_v11 = vadd.f32 %v172_v9, %v100_v10  ;;  %v189_v12 = vpop.f32.mrb[1].mxu0 }
  0xe1   :  { %v105_v13 = vsel %vm104_vm2, %v101_v11, -inf }
  0xe2   :  { %106 = vmax.xlane.f32.xlu0 %v105_v13 }
 0x16f   :  { %v107_v14 = vpop.xlane.xlu0 %106 }
 0x170   :  { %vm108_vm3 = vcmp.ge.f32.partialorder %v101_v11, %v107_v14  ;;  %v114_v17 = vsub.f32 %v101_v11, %v107_v14 }
 0x171   :  { %v109_v15 = vsel %vm108_vm3, -inf, %v101_v11 }
 0x172   :  { %v110_v16 = vsel %vm104_vm2, %v109_v15, -inf  ;;  %v115_v18 = vmul.f32 1.442695, %v114_v17 }
 0x173   :  { %111 = vmax.xlane.f32.xlu0 %v110_v16 }
 0x174   :  { %202 = vpow2.f32 %v115_v18 }
 0x17e   :  { %v203_v20 = vpop.eup %202 }
 0x200   :  { %v112_v19 = vpop.xlane.xlu0 %111 }
 0x201   :  { %vm113_vm4 = vcmp.ge.f32.partialorder %v101_v11, %v112_v19 }
 0x202   :  { %v117_v21 = vsel %vm113_vm4, %v203_v20, 0.0 }
 0x203   :  { %v118_v22 = vsel %vm104_vm2, %v117_v21, 0.0 }
 0x204   :  { %119 = vadd.xlane.f32.xlu1 %v118_v22 }
 0x291   :  { %v120_v23 = vpop.xlane.xlu1 %119 }
 0x292   :  { %204 = vrcp.f32 %v120_v23 }
 0x29c   :  { %v205_v24 = vpop.eup %204 }
 0x29d   :  { %v122_v25 = vmul.f32 %v205_v24, %v117_v21 }
 0x29f   :  { %123 = vst.msk [vmem:[#allocation2] sm:$0xff] %vm104_vm2, %v122_v25  ;;  %vm130_vm5 = vcmp.gt.f32.partialorder %v122_v25, 0.0 }
 0x2a0   :  { %v134_v27 = vsel %vm130_vm5, 1, %v258_v26 }
 0x2a1   :  { %217 = shalt.err (!%p214_p4)
}
 0x2a2   :  { %s218_s29 = scalar_lea.hbm %s335_s3, 128 }
 0x2a3   :  { %p219_p5 = scmp.ne.s32.totalorder %s335_s3, %s218_s29  ;;  %p222_p6 = scmp.lt.u32.totalorder %s218_s29, %s335_s3 }
 0x2a5   :  { %p224_p7 = pnand %p222_p6, %p219_p5 }
 0x2a7   :  { %227 = shalt.err (!%p224_p7)
}
 0x2a8   :  { %153 = dma.vmem_to_hbm [thread:$0]  %s151_s1, 128, %s335_s3, [#allocation3]   ;;  %v135_v28 = vsel %vm104_vm2, %v134_v27, 0  ;;  %vm142_vm6 = vcmask 57344  }
 0x2a9   :  { %v136_v29 = vrot.slane %v135_v28, 4  ;;  %s259_s10 = smov [#allocation4]  }
 0x2aa   :  { %s160_s11 = sshll.u32 %s259_s10, 4  ;;  %s161_s11 = int_to_ptr.vmem [resolvable:$true] %s160_s11 }
 0x2ab   :  { %v137_v30 = vadd.s32 %v136_v29, %v135_v28  ;;  %s228_s12 = scalar_lea.vmem %s161_s11, 16  ;;  %s232_s13 = scalar_lea.vmem %s161_s11, 32 }
 0x2ac   :  { %p229_p8 = scmp.ne.s32.totalorder %s161_s11, %s228_s12  ;;  %p233_p9 = scmp.lt.s32.totalorder %s161_s11, %s161_s11 }
 0x2ad   :  { %v138_v31 = vrot.slane %v137_v30, 2  ;;  %p234_p10 = scmp.lt.s32.totalorder %s232_s13, %s228_s12 }
 0x2af   :  { %v139_v32 = vadd.s32 %v138_v31, %v137_v30  ;;  %p235_p11 = por %p234_p10, %p233_p9 }
 0x2b1   :  { %v140_v33 = vrot.slane %v139_v32, 1  ;;  %p236_p12 = pnand %p235_p11, %p229_p8 }
 0x2b3   :  { %v141_v34 = vadd.s32 %v140_v33, %v139_v32 }
 0x2b5   :  { %143 = vst.msk [vmem:[#allocation4] sm:$0x1] %vm142_vm6, %v141_v34 }
 0x2b6   :  { %239 = shalt.err (!%p236_p12)
}
 0x2b7   :  { %s240_s15 = scalar_lea.hbm %s336_s4, 16 }
 0x2b8   :  { %p241_p13 = scmp.ne.s32.totalorder %s336_s4, %s240_s15  ;;  %p244_p0 = scmp.lt.u32.totalorder %s240_s15, %s336_s4 }
 0x2ba   :  { %p246_p1 = pnand %p244_p0, %p241_p13 }
 0x2bc   :  { %249 = shalt.err (!%p246_p1)
}
 0x2bd   :  { %163 = dma.vmem_to_hbm [thread:$0]  %s161_s11, 16, %s336_s4, [#allocation5]  }
 0x2be   :  { %250 = dma.done.wait [#allocation3], 128  }
 0x2bf   :  { %251 = vsyncadd [#allocation3], 4294967168 }
 0x2c0   :  { %252 = dma.done.wait [#allocation5], 16  }
 0x2c1   :  { %253 = vsyncadd [#allocation5], 4294967280 }
 0x2c2   :  { %170 = vsyncpa [#allocation3], 1 }
 0x2c3   :  { %171 = vsyncpa [#allocation5], 1 }

</bundles_post_ra>
